<compile_context>
chip_gen: v7x
topology: tpu7x:2x2x1
jax: 0.10.0
libtpu: 0.0.40
codegen_flags: <defaults>
</compile_context>

<pallas_src>
import jax
import jax.numpy as jnp
from jax.experimental import pallas as pl
from jax.experimental.pallas import tpu as pltpu


# ----------------------------------------------------------------------------
# Kernels
# ----------------------------------------------------------------------------
def critic_kernel_blockdiag(s_ref, a_ref,
                            w14_ref, b14_ref,
                            w25_ref, b25_ref,
                            w36_ref, b36_ref,
                            q_ref, x_ref):
    """Both heads fully fused: every layer is one lane-dense matmul.

    w25 = blockdiag(W2, W5)   [2*fc1, 2*fc2]
    w36 = blockdiag(W3, W6)   [2*fc2, 2]
    """
    S = s_ref.shape[1]
    A = a_ref.shape[1]
    # Concatenate state||action into a single VMEM scratch -> one layer-1
    # matmul instead of two K-padded MXU waves.
    x_ref[:, :S] = s_ref[...]
    x_ref[:, S:S + A] = a_ref[...]
    x = x_ref[...]

    h = jnp.dot(x, w14_ref[...], preferred_element_type=jnp.float32) + b14_ref[...]
    h = jnp.maximum(h, 0.0)                                     # [TB, 2*fc1]

    h = jnp.dot(h, w25_ref[...], preferred_element_type=jnp.float32) + b25_ref[...]
    h = jnp.maximum(h, 0.0)                                     # [TB, 2*fc2]

    q = jnp.dot(h, w36_ref[...], preferred_element_type=jnp.float32) + b36_ref[...]
    q_ref[...] = q.astype(q_ref.dtype)                          # [TB, 2]


def critic_kernel_split(s_ref, a_ref,
                        w14_ref, b14_ref,
                        w2_ref, b2_ref, w5_ref, b5_ref,
                        w3p_ref, w6p_ref, b36_ref,
                        q_ref, x_ref):
    """Lane-aligned variant (fc1, fc2 multiples of 128): layer-1 fused, the
    slice at lane offset fc1 is vreg-aligned, layer 2 stays per head (avoids
    the 2x layer-2 FLOPs of the block-diag form at large fc1)."""
    S = s_ref.shape[1]
    A = a_ref.shape[1]
    x_ref[:, :S] = s_ref[...]
    x_ref[:, S:S + A] = a_ref[...]
    x = x_ref[...]

    hg = jnp.dot(x, w14_ref[...], preferred_element_type=jnp.float32) + b14_ref[...]
    hg = jnp.maximum(hg, 0.0)

    fc1 = w2_ref.shape[0]
    h = hg[:, :fc1]          # lane-aligned slice (fc1 % 128 == 0)
    g = hg[:, fc1:]

    h = jnp.maximum(
        jnp.dot(h, w2_ref[...], preferred_element_type=jnp.float32) + b2_ref[...], 0.0)
    g = jnp.maximum(
        jnp.dot(g, w5_ref[...], preferred_element_type=jnp.float32) + b5_ref[...], 0.0)

    # w3p = [w3 | 0], w6p = [0 | w6] -> fused lane-dense (TB, 2) output.
    q = (jnp.dot(h, w3p_ref[...], preferred_element_type=jnp.float32)
         + jnp.dot(g, w6p_ref[...], preferred_element_type=jnp.float32)
         + b36_ref[...])
    q_ref[...] = q.astype(q_ref.dtype)


# ----------------------------------------------------------------------------
# Wrapper
# ----------------------------------------------------------------------------
def _round_up(x, m):
    return ((x + m - 1) // m) * m


def _choose_batch_tile(batch):
    """>=2 grid steps when batch allows it (megacore sharding on v7x), capped
    at 1024 rows (fewer steps on v5e/v6e, no VMEM risk)."""
    half = _round_up(max(1, (batch + 1) // 2), 8)
    tb = min(1024, half)
    tb = min(tb, _round_up(batch, 8))
    return max(8, tb)


def critic_forward(state, action, packed):
    """state: [B, S], action: [B, A]; packed: dict from pack_params()."""
    batch, S = state.shape
    A = action.shape[1]
    mode = packed["mode"]

    fc1 = packed["b14"].shape[1] // 2
    if mode == "blockdiag":
        fc2 = packed["b25"].shape[1] // 2
        kernel = critic_kernel_blockdiag
        weights = (packed["W14"], packed["b14"],
                   packed["W25"], packed["b25"],
                   packed["W36"], packed["b36"])
    else:
        fc2 = packed["W2"].shape[1]
        kernel = critic_kernel_split
        weights = (packed["W14"], packed["b14"],
                   packed["W2"], packed["b2"],
                   packed["W5"], packed["b5"],
                   packed["W3p"], packed["W6p"], packed["b36"])

    TB = _choose_batch_tile(batch)
    grid = (pl.cdiv(batch, TB),)

    def batch_spec(feat):
        return pl.BlockSpec((TB, feat), lambda i: (i, 0))

    def resident(arr):
        # Grid-invariant weight: constant block index -> fetched once, kept
        # resident in VMEM across all grid steps.
        return pl.BlockSpec(arr.shape, lambda i: (0, 0))

    in_specs = [batch_spec(S), batch_spec(A)] + [resident(w) for w in weights]
    out_specs = pl.BlockSpec((TB, 2), lambda i: (i, 0))

    # VMEM budget: double-buffered I/O tiles + resident weights + scratch +
    # headroom for the activation intermediates. v5e's scoped default is only
    # 16 MiB, so set it explicitly (capped well below v7x's 64 MiB physical).
    weight_bytes = sum(int(w.size) * w.dtype.itemsize for w in weights)
    io_bytes = 4 * TB * (S + A + 2)
    act_bytes = 4 * TB * (2 * fc1 + 2 * fc2 + (S + A))
    vmem_est = 2 * (weight_bytes + io_bytes) + 2 * act_bytes + (4 << 20)
    vmem_limit = int(min(max(vmem_est, 32 << 20), 48 << 20))

    # Useful FLOPs (layer 3 counted as fc2 MACs per head, not the padded form).
    flops = 2 * batch * ((S + A) * 2 * fc1 + 2 * fc1 * fc2 + 2 * fc2)
    bytes_accessed = (4 * (state.size + action.size + batch * 2) + weight_bytes)

    q = pl.pallas_call(
        kernel,
        out_shape=jax.ShapeDtypeStruct((batch, 2), jnp.float32),
        grid=grid,
        in_specs=in_specs,
        out_specs=out_specs,
        scratch_shapes=[pltpu.VMEM((TB, S + A), jnp.float32)],
        compiler_params=pltpu.CompilerParams(
            dimension_semantics=("parallel",),
            vmem_limit_bytes=vmem_limit),
        cost_estimate=pl.CostEstimate(
            flops=int(flops), transcendentals=0,
            bytes_accessed=int(bytes_accessed)),
    )(state, action, *weights)

    return q[:, 0:1], q[:, 1:2]


# ----------------------------------------------------------------------------
# Parameter construction / packing
# ----------------------------------------------------------------------------
def init_linear(key, fan_in, fan_out):
    """PyTorch-style uniform init U(-1/sqrt(fan_in), 1/sqrt(fan_in)).
    W returned as [in, out] (transposed vs nn.Linear storage), b as [1, out]."""
    kw, kb = jax.random.split(key)
    bound = 1.0 / jnp.sqrt(jnp.float32(fan_in))
    W = jax.random.uniform(kw, (fan_in, fan_out), jnp.float32, -bound, bound)
    b = jax.random.uniform(kb, (1, fan_out), jnp.float32, -bound, bound)
    return W, b


def make_params(state_size, action_size, fc1=256, fc2=256, seed=0):
    key = jax.random.PRNGKey(seed)
    keys = jax.random.split(key, 6)
    d_in = state_size + action_size
    p = {}
    p["W1"], p["b1"] = init_linear(keys[0], d_in, fc1)
    p["W2"], p["b2"] = init_linear(keys[1], fc1, fc2)
    p["W3"], p["b3"] = init_linear(keys[2], fc2, 1)
    p["W4"], p["b4"] = init_linear(keys[3], d_in, fc1)
    p["W5"], p["b5"] = init_linear(keys[4], fc1, fc2)
    p["W6"], p["b6"] = init_linear(keys[5], fc2, 1)
    return p


def pack_params(p):
    """Pack per-layer params into the fused layout the kernel expects.
    Layer 1 of both heads is always fused on the lane axis. Layers 2/3 use
    the lane-aligned split layout when fc1/fc2 are multiples of 128,
    otherwise a block-diagonal layout that avoids sub-128-lane slices."""
    fc1, fc2 = p["W2"].shape
    W14 = jnp.concatenate([p["W1"], p["W4"]], axis=1)          # [S+A, 2*fc1]
    b14 = jnp.concatenate([p["b1"], p["b4"]], axis=1)          # [1, 2*fc1]
    b36 = jnp.concatenate([p["b3"], p["b6"]], axis=1)          # [1, 2]

    lane_aligned = (fc1 % 128 == 0) and (fc2 % 128 == 0)
    if lane_aligned:
        z = jnp.zeros((fc2, 1), jnp.float32)
        return {
            "mode": "split",
            "W14": W14, "b14": b14,
            "W2": p["W2"], "b2": p["b2"],
            "W5": p["W5"], "b5": p["b5"],
            "W3p": jnp.concatenate([p["W3"], z], axis=1),      # [fc2, 2]
            "W6p": jnp.concatenate([z, p["W6"]], axis=1),      # [fc2, 2]
            "b36": b36,
        }
    # Block-diagonal layout: one matmul per layer for both heads.
    W25 = jnp.zeros((2 * fc1, 2 * fc2), jnp.float32)
    W25 = W25.at[:fc1, :fc2].set(p["W2"]).at[fc1:, fc2:].set(p["W5"])
    b25 = jnp.concatenate([p["b2"], p["b5"]], axis=1)          # [1, 2*fc2]
    W36 = jnp.zeros((2 * fc2, 2), jnp.float32)
    W36 = W36.at[:fc2, 0].set(p["W3"][:, 0]).at[fc2:, 1].set(p["W6"][:, 0])
    return {
        "mode": "blockdiag",
        "W14": W14, "b14": b14,
        "W25": W25, "b25": b25,
        "W36": W36, "b36": b36,
    }


def reference_forward(state, action, params):
    """Pure-JAX reference matching the PyTorch module."""
    x = jnp.concatenate([state, action], axis=1)
    h = jnp.maximum(x @ params["W1"] + params["b1"], 0.0)
    h = jnp.maximum(h @ params["W2"] + params["b2"], 0.0)
    q1 = h @ params["W3"] + params["b3"]
    g = jnp.maximum(x @ params["W4"] + params["b4"], 0.0)
    g = jnp.maximum(g @ params["W5"] + params["b5"], 0.0)
    q2 = g @ params["W6"] + params["b6"]
    return q1, q2


if __name__ == "__main__":
    # ---- Case 1: toy shapes (fc1=fc2=32 -> block-diag path, grid of 2) ----
    batch, state_size, action_size = 16, 12, 4
    key = jax.random.PRNGKey(0)
    ks, ka = jax.random.split(key)
    state = jax.random.normal(ks, (batch, state_size), jnp.float32)
    action = jax.random.normal(ka, (batch, action_size), jnp.float32)

    raw = make_params(state_size, action_size, fc1=32, fc2=32, seed=0)
    packed = pack_params(raw)

    q1, q2 = critic_forward(state, action, packed)
    jax.block_until_ready((q1, q2))

    q1_ref, q2_ref = reference_forward(state, action, raw)
    assert q1.shape == (batch, 1) and q2.shape == (batch, 1)
    assert jnp.allclose(q1, q1_ref, atol=1e-5, rtol=1e-5)
    assert jnp.allclose(q2, q2_ref, atol=1e-5, rtol=1e-5)

    # ---- Case 2: lane-aligned hidden size (fc1=fc2=128 -> split path) ----
    batch2 = 8
    ks2, ka2 = jax.random.split(jax.random.PRNGKey(1))
    state2 = jax.random.normal(ks2, (batch2, state_size), jnp.float32)
    action2 = jax.random.normal(ka2, (batch2, action_size), jnp.float32)

    raw2 = make_params(state_size, action_size, fc1=128, fc2=128, seed=2)
    packed2 = pack_params(raw2)

    q1b, q2b = critic_forward(state2, action2, packed2)
    jax.block_until_ready((q1b, q2b))

    q1b_ref, q2b_ref = reference_forward(state2, action2, raw2)
    # Slightly looser tolerance: larger contraction depth -> different f32
    # MXU pass accumulation order vs. the XLA reference.
    assert jnp.allclose(q1b, q1b_ref, atol=1e-4, rtol=1e-4)
    assert jnp.allclose(q2b, q2b_ref, atol=1e-4, rtol=1e-4)

    print("KERNEL_OK")
</pallas_src>

<mosaic_0001>
module attributes {stable_mosaic.version = 11 : i64} {
  func.func @critic_kernel_blockdiag(%arg0: i32, %arg1: memref<8x12xf32, #tpu.memory_space<vmem>>, %arg2: memref<8x4xf32, #tpu.memory_space<vmem>>, %arg3: memref<16x64xf32, #tpu.memory_space<vmem>>, %arg4: memref<1x64xf32, #tpu.memory_space<vmem>>, %arg5: memref<64x64xf32, #tpu.memory_space<vmem>>, %arg6: memref<1x64xf32, #tpu.memory_space<vmem>>, %arg7: memref<64x2xf32, #tpu.memory_space<vmem>>, %arg8: memref<1x2xf32, #tpu.memory_space<vmem>>, %arg9: memref<8x2xf32, #tpu.memory_space<vmem>>, %arg10: memref<8x16xf32, #tpu.memory_space<vmem>>) attributes {dimension_semantics = [#tpu.dimension_semantics<parallel>], iteration_bounds = array<i64: 2>, scalar_prefetch = 0 : i64, scratch_operands = 1 : i64, tpu.core_type = #tpu.core_type<tc>, window_params = [{transform_indices = @transform_0, window_bounds = array<i64: 8, 12>}, {transform_indices = @transform_1, window_bounds = array<i64: 8, 4>}, {pipeline_mode = #tpu.pipeline_mode<synchronous>, transform_indices = @transform_2, window_bounds = array<i64: 16, 64>}, {pipeline_mode = #tpu.pipeline_mode<synchronous>, transform_indices = @transform_3, window_bounds = array<i64: 1, 64>}, {pipeline_mode = #tpu.pipeline_mode<synchronous>, transform_indices = @transform_4, window_bounds = array<i64: 64, 64>}, {pipeline_mode = #tpu.pipeline_mode<synchronous>, transform_indices = @transform_5, window_bounds = array<i64: 1, 64>}, {pipeline_mode = #tpu.pipeline_mode<synchronous>, transform_indices = @transform_6, window_bounds = array<i64: 64, 2>}, {pipeline_mode = #tpu.pipeline_mode<synchronous>, transform_indices = @transform_7, window_bounds = array<i64: 1, 2>}, {transform_indices = @transform_8, window_bounds = array<i64: 8, 2>}]} {
    %c0 = arith.constant 0 : index
    %c0_0 = arith.constant 0 : index
    %0 = vector.load %arg1[%c0, %c0_0] : memref<8x12xf32, #tpu.memory_space<vmem>>, vector<8x12xf32>
    %c0_1 = arith.constant 0 : index
    %c0_2 = arith.constant 0 : index
    %1 = vector.load %arg10[%c0_1, %c0_2] : memref<8x16xf32, #tpu.memory_space<vmem>>, vector<8x12xf32>
    tpu.vector_store %arg10[%c0_1, %c0_2], %0 {strides = array<i32>} : memref<8x16xf32, #tpu.memory_space<vmem>>, vector<8x12xf32>,
    %c0_3 = arith.constant 0 : index
    %c0_4 = arith.constant 0 : index
    %2 = vector.load %arg2[%c0_3, %c0_4] : memref<8x4xf32, #tpu.memory_space<vmem>>, vector<8x4xf32>
    %c0_5 = arith.constant 0 : index
    %c12 = arith.constant 12 : index
    %3 = vector.load %arg10[%c0_5, %c12] : memref<8x16xf32, #tpu.memory_space<vmem>>, vector<8x4xf32>
    tpu.vector_store %arg10[%c0_5, %c12], %2 {strides = array<i32>} : memref<8x16xf32, #tpu.memory_space<vmem>>, vector<8x4xf32>,
    %c0_6 = arith.constant 0 : index
    %c0_7 = arith.constant 0 : index
    %4 = vector.load %arg10[%c0_6, %c0_7] : memref<8x16xf32, #tpu.memory_space<vmem>>, vector<8x16xf32>
    %c0_8 = arith.constant 0 : index
    %c0_9 = arith.constant 0 : index
    %5 = vector.load %arg3[%c0_8, %c0_9] : memref<16x64xf32, #tpu.memory_space<vmem>>, vector<16x64xf32>
    %cst = arith.constant dense<0.000000e+00> : vector<8x64xf32>
    %6 = tpu.matmul %4, %5, %cst {dimension_numbers = #tpu.dot_dimension_numbers<[1], [0], [0], [1], [0, 0, 1, 1], [], []>} : vector<8x16xf32>, vector<16x64xf32>, vector<8x64xf32> -> vector<8x64xf32>
    %c0_10 = arith.constant 0 : index
    %c0_11 = arith.constant 0 : index
    %7 = vector.load %arg4[%c0_10, %c0_11] : memref<1x64xf32, #tpu.memory_space<vmem>>, vector<1x64xf32>
    %8 = vector.broadcast %7 : vector<1x64xf32> to vector<8x64xf32>
    %9 = arith.addf %6, %8 : vector<8x64xf32>
    %cst_12 = arith.constant 0.000000e+00 : f32
    %10 = vector.broadcast %cst_12 : f32 to vector<8x64xf32>
    %11 = arith.maximumf %9, %10 : vector<8x64xf32>
    %c0_13 = arith.constant 0 : index
    %c0_14 = arith.constant 0 : index
    %12 = vector.load %arg5[%c0_13, %c0_14] : memref<64x64xf32, #tpu.memory_space<vmem>>, vector<64x64xf32>
    %cst_15 = arith.constant dense<0.000000e+00> : vector<8x64xf32>
    %13 = tpu.matmul %11, %12, %cst_15 {dimension_numbers = #tpu.dot_dimension_numbers<[1], [0], [0], [1], [0, 0, 1, 1], [], []>} : vector<8x64xf32>, vector<64x64xf32>, vector<8x64xf32> -> vector<8x64xf32>
    %c0_16 = arith.constant 0 : index
    %c0_17 = arith.constant 0 : index
    %14 = vector.load %arg6[%c0_16, %c0_17] : memref<1x64xf32, #tpu.memory_space<vmem>>, vector<1x64xf32>
    %15 = vector.broadcast %14 : vector<1x64xf32> to vector<8x64xf32>
    %16 = arith.addf %13, %15 : vector<8x64xf32>
    %cst_18 = arith.constant 0.000000e+00 : f32
    %17 = vector.broadcast %cst_18 : f32 to vector<8x64xf32>
    %18 = arith.maximumf %16, %17 : vector<8x64xf32>
    %c0_19 = arith.constant 0 : index
    %c0_20 = arith.constant 0 : index
    %19 = vector.load %arg7[%c0_19, %c0_20] : memref<64x2xf32, #tpu.memory_space<vmem>>, vector<64x2xf32>
    %cst_21 = arith.constant dense<0.000000e+00> : vector<8x2xf32>
    %20 = tpu.matmul %18, %19, %cst_21 {dimension_numbers = #tpu.dot_dimension_numbers<[1], [0], [0], [1], [0, 0, 1, 1], [], []>} : vector<8x64xf32>, vector<64x2xf32>, vector<8x2xf32> -> vector<8x2xf32>
    %c0_22 = arith.constant 0 : index
    %c0_23 = arith.constant 0 : index
    %21 = vector.load %arg8[%c0_22, %c0_23] : memref<1x2xf32, #tpu.memory_space<vmem>>, vector<1x2xf32>
    %22 = vector.broadcast %21 : vector<1x2xf32> to vector<8x2xf32>
    %23 = arith.addf %20, %22 : vector<8x2xf32>
    %c0_24 = arith.constant 0 : index
    %c0_25 = arith.constant 0 : index
    %24 = vector.load %arg9[%c0_24, %c0_25] : memref<8x2xf32, #tpu.memory_space<vmem>>, vector<8x2xf32>
    tpu.vector_store %arg9[%c0_24, %c0_25], %23 {strides = array<i32>} : memref<8x2xf32, #tpu.memory_space<vmem>>, vector<8x2xf32>,
    return
  }
  func.func @transform_0(%arg0: i32) -> (i32, i32) {
    %c0_i32 = arith.constant 0 : i32
    %c0_i32_0 = arith.constant 0 : i32
    return %arg0, %c0_i32 : i32, i32
  }
  func.func @transform_1(%arg0: i32) -> (i32, i32) {
    %c0_i32 = arith.constant 0 : i32
    %c0_i32_0 = arith.constant 0 : i32
    return %arg0, %c0_i32 : i32, i32
  }
  func.func @transform_2(%arg0: i32) -> (i32, i32) {
    %c0_i32 = arith.constant 0 : i32
    %c0_i32_0 = arith.constant 0 : i32
    %c0_i32_1 = arith.constant 0 : i32
    return %c0_i32, %c0_i32_0 : i32, i32
  }
  func.func @transform_3(%arg0: i32) -> (i32, i32) {
    %c0_i32 = arith.constant 0 : i32
    %c0_i32_0 = arith.constant 0 : i32
    %c0_i32_1 = arith.constant 0 : i32
    return %c0_i32, %c0_i32_0 : i32, i32
  }
  func.func @transform_4(%arg0: i32) -> (i32, i32) {
    %c0_i32 = arith.constant 0 : i32
    %c0_i32_0 = arith.constant 0 : i32
    %c0_i32_1 = arith.constant 0 : i32
    return %c0_i32, %c0_i32_0 : i32, i32
  }
  func.func @transform_5(%arg0: i32) -> (i32, i32) {
    %c0_i32 = arith.constant 0 : i32
    %c0_i32_0 = arith.constant 0 : i32
    %c0_i32_1 = arith.constant 0 : i32
    return %c0_i32, %c0_i32_0 : i32, i32
  }
  func.func @transform_6(%arg0: i32) -> (i32, i32) {
    %c0_i32 = arith.constant 0 : i32
    %c0_i32_0 = arith.constant 0 : i32
    %c0_i32_1 = arith.constant 0 : i32
    return %c0_i32, %c0_i32_0 : i32, i32
  }
  func.func @transform_7(%arg0: i32) -> (i32, i32) {
    %c0_i32 = arith.constant 0 : i32
    %c0_i32_0 = arith.constant 0 : i32
    %c0_i32_1 = arith.constant 0 : i32
    return %c0_i32, %c0_i32_0 : i32, i32
  }
  func.func @transform_8(%arg0: i32) -> (i32, i32) {
    %c0_i32 = arith.constant 0 : i32
    %c0_i32_0 = arith.constant 0 : i32
    return %arg0, %c0_i32 : i32, i32
  }
}

</mosaic_0001>

<bundles_post_ra>
// kernel: tpu_custom_call.1
= control target key start
LH: loop header
LB: loop body
LE: loop exit
PB: predicated region body
PF: predicated region fallthrough
CT: control target
= control target key end

     0   :  { %s836_s27 = smov 0   ;;  %s927_s0 = inlined_call_operand.vmem [shape: f32[16,12], index: 0, kind: input, shape index: {}]   ;;  %s928_s1 = inlined_call_operand.vmem [shape: f32[16,4], index: 1, kind: input, shape index: {}]   ;;  %s929_s2 = inlined_call_operand.vmem [shape: f32[16,64], index: 2, kind: input, shape index: {}]   ;;  %s930_s3 = inlined_call_operand.vmem [shape: f32[1,64], index: 3, kind: input, shape index: {}]   ;;  %s931_s4 = inlined_call_operand.vmem [shape: f32[64,64], index: 4, kind: input, shape index: {}]   ;;  %s932_s5 = inlined_call_operand.vmem [shape: f32[1,64], index: 5, kind: input, shape index: {}]   ;;  %s933_s6 = inlined_call_operand.vmem [shape: f32[64,2], index: 6, kind: input, shape index: {}]   ;;  %s934_s7 = inlined_call_operand.vmem [shape: f32[1,2], index: 7, kind: input, shape index: {}]   ;;  %s935_s8 = inlined_call_operand.vmem [shape: f32[16,2], index: 8, kind: output, shape index: {}]  }
   0x1 LB: > { %s658_s28 = sadd.s32 4294967295, %s785_s27   ;;  %p662_p0 = scmp.ge.s32.totalorder %s785_s27, 1  ;;  %s785_s27 = sphi %s836_s27, %s18_s27  }
   0x2   : > { %p270_p1 = scmp.lt.s32.totalorder %s785_s27, 3 }
   0x4   : > { %p271_p2 = pnand %p662_p0, %p270_p1 }
   0x5   : > { %p306_p3 = scmp.lt.s32.totalorder (!%p271_p2), %s658_s28, 1  ;;  %v329_v0 = vld [vmem:[%s929_s2] sm:$0xff] (!%p271_p2)  ;;  %v787_v1 = vmov (!%p271_p2), 0.0|0.0   ;;  %v330_v2 = vld [vmem:[%s929_s2 + $0x8] sm:$0xff] (!%p271_p2)  ;;  %vm788_vm0 = vmmov (!%p271_p2), 0   ;;  %v789_v4 = vmov (!%p271_p2), 0.0  }
   0x6   : > { %274 = sbr.rel (%p271_p2) target bundleno = 787 (0x313), region = 52  ;;  %740 = vmatprep.subr.bf16.mxu0 (!%p271_p2), %v787_v1  ;;  %743 = vmatprep.subr.bf16.mxu1 (!%p271_p2), %v787_v1  ;;  %v741_v3 = vpack.c.bf16 (!%p271_p2), %v330_v2, %v329_v0  ;;  %v413_v5 = vld [vmem:[%s931_s4] sm:$0xff] (!%p271_p2)  ;;  %v414_v6 = vld [vmem:[%s931_s4 + $0x8] sm:$0xff] (!%p271_p2)  ;;  %v415_v7 = vld [vmem:[%s931_s4 + $0x10] sm:$0xff] (!%p271_p2)  ;;  %vm319_vm1 = vcmask (!%p271_p2), 97280   ;;  %s790_s9 = smov (!%p271_p2), 12  }
   0x7   : > { %699 = vmatprep.mubr.msk.f32.mxu0 (!%p271_p2), %vm788_vm0, %v789_v4  ;;  %718 = vmatprep.mubr.msk.f32.mxu1 (!%p271_p2), %vm788_vm0, %v789_v4  ;;  %v744_v8 = vpack.c.bf16 (!%p271_p2), %v414_v6, %v413_v5  ;;  %v416_v9 = vld [vmem:[%s931_s4 + $0x18] sm:$0xff] (!%p271_p2)  ;;  %v417_v12 = vld [vmem:[%s931_s4 + $0x20] sm:$0xff] (!%p271_p2)  ;;  %v418_v13 = vld [vmem:[%s931_s4 + $0x28] sm:$0xff] (!%p271_p2)  ;;  %vm326_vm2 = vcmask (!%p271_p2), 130144   ;;  %vm338_vm3 = vcmask (!%p271_p2), 130048   ;;  %vm428_vm4 = vcmask (!%p271_p2), 523264  }
   0x8   : > { %742 = vmatpush3.bf16.msra.mxu0 (!%p271_p2), %v741_v3  ;;  %v747_v10 = vpack.c.bf16 (!%p271_p2), %v416_v9, %v415_v7  ;;  %v750_v15 = vpack.c.bf16 (!%p271_p2), %v418_v13, %v417_v12  ;;  %v419_v18 = vld [vmem:[%s931_s4 + $0x30] sm:$0xff] (!%p271_p2)  ;;  %v420_v19 = vld [vmem:[%s931_s4 + $0x38] sm:$0xff] (!%p271_p2)  ;;  %v503_v21 = vld [vmem:[%s933_s6] sm:$0xff] (!%p271_p2)  ;;  %vm591_vm5 = vcmask (!%p271_p2), 15360  }
   0x9   : > { %745 = vmatpush3.bf16.msra.mxu1 (!%p271_p2), %v744_v8  ;;  %755 = vmatprep.subr.bf16.mxu0 (!%p271_p2), %v787_v1  ;;  %v753_v20 = vpack.c.bf16 (!%p271_p2), %v420_v19, %v419_v18  ;;  %v504_v22 = vld [vmem:[%s933_s6 + $0x8] sm:$0xff] (!%p271_p2)  ;;  %v505_v23 = vld [vmem:[%s933_s6 + $0x10] sm:$0xff] (!%p271_p2)  ;;  %v506_v25 = vld [vmem:[%s933_s6 + $0x18] sm:$0xff] (!%p271_p2) }
   0xa   : > { %746 = vmatprep.subr.bf16.mxu1 (!%p271_p2), %v787_v1  ;;  %v756_v24 = vpack.c.bf16 (!%p271_p2), %v504_v22, %v503_v21  ;;  %v759_v26 = vpack.c.bf16 (!%p271_p2), %v506_v25, %v505_v23  ;;  %v507_v27 = vld [vmem:[%s933_s6 + $0x20] sm:$0xff] (!%p271_p2)  ;;  %v508_v28 = vld [vmem:[%s933_s6 + $0x28] sm:$0xff] (!%p271_p2)  ;;  %v509_v35 = vld [vmem:[%s933_s6 + $0x30] sm:$0xff] (!%p271_p2) }
   0xb   : > { %v762_v29 = vpack.c.bf16 (!%p271_p2), %v508_v28, %v507_v27  ;;  %v666_v30 = vld [vmem:[%s930_s3] ss:$0 sm:$0xff] (!%p271_p2)  ;;  %v510_v36 = vld [vmem:[%s933_s6 + $0x38] sm:$0xff] (!%p271_p2) }
   0xc   : > { %v765_v37 = vpack.c.bf16 (!%p271_p2), %v510_v36, %v509_v35  ;;  %v668_v38 = vld [vmem:[%s932_s5] ss:$0 sm:$0xff] (!%p271_p2) }
   0xd   : > { %s937_s28 = smov (!%p306_p3, %s658_s28), 1  ;;  %748 = vmatpush3.bf16.msra.mxu1 %v747_v10  ;;  %v670_v43 = vld [vmem:[%s934_s7] ss:$0 sm:$0xff] }
   0xe   : > { %s864_s19 = sshll.u32 %s937_s28, 3  ;;  %749 = vmatprep.subr.bf16.mxu1 %v787_v1 }
   0xf   : > { %s313_s22 = scalar_lea.vmem %s928_s1, %s864_s19  ;;  %s309_s25 = scalar_lea.vmem %s927_s0, %s864_s19 }
  0x10   : > { %v321_v11 = vld [vmem:[%s313_s22] sm:$0xff]  ;;  %s317_s18 = scalar_lea.vmem %s935_s8, %s864_s19 }
  0x11   : > { %323 = vrot.lane.b32.xlu0 %v321_v11, %s790_s9  ;;  %v318_v14 = vld [vmem:[%s309_s25] sm:$0xff]  ;;  %751 = vmatpush3.bf16.msra.mxu1 %v750_v15 }
  0x12   : > { %320 = vst.msk [vmem:[#allocation2] sm:$0xff] %vm319_vm1, %v318_v14  ;;  %752 = vmatprep.subr.bf16.mxu1 %v787_v1 }
  0x15   : > { %754 = vmatpush3.bf16.msra.mxu1 %v753_v20 }
  0x83   : > { %v324_v16 = vpop.permute.xlu0 %323 }
  0x84   : > { %327 = vst.msk [vmem:[#allocation2] sm:$0xff] %vm326_vm2, %v324_v16 }
  0x8b   : > { %v328_v17 = vld [vmem:[#allocation2] sm:$0xff] }
  0x8c   : > { %700 = vmatmul.mubr.msk.f32.vlgmr.msra.gmra.mrb[0].mxu0 %vm338_vm3, %v328_v17 }
  0x8d   : > { %737 = vmatprep.mubr.msk.f32.mxu0 %vm788_vm0, %v789_v4  ;;  %757 = vmatpush3.bf16.msra.mxu0 %v756_v24 }
  0x8e   : > { %758 = vmatprep.subr.bf16.mxu0 %v787_v1 }
  0x91   : > { %760 = vmatpush3.bf16.msra.mxu0 %v759_v26 }
  0x92   : > { %761 = vmatprep.subr.bf16.mxu0 %v787_v1 }
  0x95   : > { %763 = vmatpush3.bf16.msra.mxu0 %v762_v29 }
  0x96   : > { %764 = vmatprep.subr.bf16.mxu0 %v787_v1 }
  0x99   : > { %766 = vmatpush3.bf16.msra.mxu0 %v765_v37 }
 0x15f   : > { %v408_v31 = vpop.f32.mrb[0].mxu0 }
 0x160   : > { %v409_v32 = vadd.f32 %v666_v30, %v408_v31  ;;  %v701_v33 = vpop.f32.mrb[1].mxu0 }
 0x162   : > { %v412_v34 = vmax.f32 %v409_v32, 0.0 }
 0x164   : > { %719 = vmatmul.mubr.msk.f32.vlgmr.msra.gmra.mrb[0].mxu1 %vm428_vm4, %v412_v34 }
 0x237   : > { %v498_v39 = vpop.f32.mrb[0].mxu1 }
 0x238   : > { %v499_v40 = vadd.f32 %v668_v38, %v498_v39  ;;  %v720_v41 = vpop.f32.mrb[1].mxu1 }
 0x23a   : > { %v502_v42 = vmax.f32 %v499_v40, 0.0 }
 0x23c   : > { %738 = vmatmul.mubr.msk.f32.vlgmr.msra.gmra.mrb[2].mxu0 %vm428_vm4, %v502_v42 }
 0x30f   : > { %v587_v44 = vpop.f32.mrb[2].mxu0 }
 0x310   : > { %v588_v45 = vadd.f32 %v670_v43, %v587_v44  ;;  %v739_v46 = vpop.f32.mrb[3].mxu0 }
 0x312   : > { %592 = vst.msk [vmem:[%s317_s18] sm:$0xff] %vm591_vm5, %v588_v45 }
 0x313 PF: > { %s18_s27 = sadd.s32 1, %s785_s27  }
 0x314   : > { %p15_p4 = scmp.ge.s32.totalorder %s18_s27, 4  }
 0x316   :  { %17 = sbr.rel (!%p15_p4) target bundleno = 1 (0x1), region = 85 }

</bundles_post_ra>
